<compile_context>
chip_gen: v7x
topology: tpu7x:2x2x1
jax: 0.10.0
libtpu: 0.0.40
codegen_flags: <defaults>
</compile_context>

<pallas_src>
import math
import functools

import jax
import jax.numpy as jnp
from jax import lax
from jax.experimental import pallas as pl
from jax.experimental.pallas import tpu as pltpu


# ---------------------------------------------------------------------------
# Generation-aware VMEM limit and tile pickers
# ---------------------------------------------------------------------------
def _vmem_limit_bytes():
    """~3/4 of physical VMEM per generation, conservative 32 MiB fallback."""
    try:
        cap = getattr(pltpu.get_tpu_info(), "vmem_capacity_bytes", None)
        if cap:
            # v5e/v6e (128 MiB) -> 96 MiB ; v7x (64 MiB) -> 48 MiB.
            return max(32 * 1024 * 1024, min(int(cap) * 3 // 4, 112 * 1024 * 1024))
    except Exception:
        pass
    return 32 * 1024 * 1024


def _pick_row_block(T, target):
    """Largest multiple-of-8 divisor of T that is <= target (else T itself)."""
    if T <= target:
        return T
    for blk in range(target, 7, -8):
        if T % blk == 0:
            return blk
    return T


def _pick_lane_block(N, target=2048):
    """Largest multiple-of-128 divisor of N that is <= target (else N itself)."""
    if N <= target:
        return N
    for blk in range(target, 127, -128):
        if N % blk == 0:
            return blk
    return N


# ---------------------------------------------------------------------------
# Stage 1: fused QKV projection -> (3, B, T, C) bf16, merged-head layout
# ---------------------------------------------------------------------------
def _qkv_kernel(x_ref, w_ref, b_ref, o_ref):
    # In-kernel bf16 cast (VPU work hidden under the MXU); avoids a separate
    # wrapper-side astype pass (full HBM read+write of (B, T, C)).
    x = x_ref[0].astype(jnp.bfloat16)                           # (tm, C)
    y = jnp.dot(x, w_ref[0], preferred_element_type=jnp.float32) + b_ref[0]
    o_ref[0, 0] = y.astype(o_ref.dtype)


def _qkv_projection(x, w_qkv3, b_qkv3, *, tm, vmem_limit):
    """x:(B,T,C) f32, w_qkv3:(3,C,C) bf16 (in,out), b_qkv3:(3,1,C) f32."""
    B, T, C = x.shape
    return pl.pallas_call(
        _qkv_kernel,
        out_shape=jax.ShapeDtypeStruct((3, B, T, C), jnp.bfloat16),
        grid_spec=pltpu.PrefetchScalarGridSpec(
            num_scalar_prefetch=0,
            # j (q/k/v) innermost: x block index is constant across it, so its
            # DMA is elided; the weight block is only (C, C) per step.
            grid=(B, T // tm, 3),
            in_specs=[
                pl.BlockSpec((1, tm, C), lambda b, t, j: (b, t, 0)),
                pl.BlockSpec((1, C, C), lambda b, t, j: (j, 0, 0)),
                pl.BlockSpec((1, 1, C), lambda b, t, j: (j, 0, 0)),
            ],
            out_specs=pl.BlockSpec((1, 1, tm, C), lambda b, t, j: (j, b, t, 0)),
        ),
        compiler_params=pltpu.CompilerParams(
            dimension_semantics=("parallel", "parallel", "arbitrary"),
            vmem_limit_bytes=vmem_limit),
    )(x, w_qkv3, b_qkv3)


# ---------------------------------------------------------------------------
# Stage 2: flash-style causal attention, all heads per step, (B, T, C) layout
# ---------------------------------------------------------------------------
def _attn_kernel(qi_tbl, ki_tbl, q_ref, k_ref, v_ref, o_ref,
                 m_scr, l_scr, acc_scr, *, n_head, hd, tq, tk, scale):
    step = pl.program_id(1)
    qi = qi_tbl[step]
    ki = ki_tbl[step]

    @pl.when(ki == 0)
    def _init():
        m_scr[...] = jnp.full_like(m_scr, -1e30)
        l_scr[...] = jnp.zeros_like(l_scr)
        acc_scr[...] = jnp.zeros_like(acc_scr)

    def _attend(apply_mask):
        q = q_ref[0, 0]                       # (tq, C) bf16, all heads
        k = k_ref[0, 0]                       # (tk, C)
        v = v_ref[0, 0]                       # (tk, C)
        acc_prev = acc_scr[...]               # (tq, C) f32

        if apply_mask:
            # Only diagonal blocks are masked; q_start == k_start there
            # (tq == tk), so the block-local lower-triangle test suffices.
            row = lax.broadcasted_iota(jnp.int32, (tq, tk), 0)
            col = lax.broadcasted_iota(jnp.int32, (tq, tk), 1)
            keep = col <= row

        new_acc = []
        for h in range(n_head):               # head-batched: all heads per grid step
            sl = slice(h * hd, (h + 1) * hd)
            s = lax.dot_general(q[:, sl], k[:, sl], (((1,), (1,)), ((), ())),
                                preferred_element_type=jnp.float32) * scale
            if apply_mask:
                s = jnp.where(keep, s, -1e30)

            m_prev = m_scr[h]                                     # (tq, 128) lane-dense
            l_prev = l_scr[h]
            m_next = jnp.maximum(m_prev, jnp.max(s, axis=-1, keepdims=True))
            alpha = jnp.exp(m_prev - m_next)                      # (tq, 128)
            p = jnp.exp(s - m_next[:, :1])                        # (tq, tk)
            l_next = alpha * l_prev + jnp.sum(p, axis=-1, keepdims=True)

            pv = jnp.dot(p.astype(v.dtype), v[:, sl],
                         preferred_element_type=jnp.float32)      # (tq, hd)
            new_acc.append(acc_prev[:, sl] * alpha[:, :1] + pv)

            m_scr[h] = m_next
            l_scr[h] = l_next
        acc_scr[...] = jnp.concatenate(new_acc, axis=-1)          # one lane-dense store

    @pl.when(ki < qi)
    def _interior():                          # strictly below diagonal: no mask ops
        _attend(apply_mask=False)

    @pl.when(ki == qi)
    def _diag_and_finalize():                 # diagonal block == last kv block per row
        _attend(apply_mask=True)
        acc = acc_scr[...]                    # (tq, C) f32
        outs = []
        for h in range(n_head):
            sl = slice(h * hd, (h + 1) * hd)
            inv_l = pl.reciprocal(l_scr[h][:, :1], approx=True)   # (tq, 1)
            outs.append(acc[:, sl] * inv_l)
        o_ref[0] = jnp.concatenate(outs, axis=-1).astype(o_ref.dtype)


def _flash_attention(qkv3, n_head, *, tq, tk, vmem_limit):
    _, B, T, C = qkv3.shape
    hd = C // n_head
    assert tq == tk and T % tq == 0
    nq = T // tq

    # Triangular (qi, ki) schedule: fully-masked upper-triangle blocks are never
    # visited -> no wasted K/V DMA and no wasted per-step pipeline overhead.
    pairs = [(q, k) for q in range(nq) for k in range(q + 1)]
    qi_tbl = jnp.asarray([p[0] for p in pairs], dtype=jnp.int32)
    ki_tbl = jnp.asarray([p[1] for p in pairs], dtype=jnp.int32)
    n_steps = len(pairs)

    kernel = functools.partial(_attn_kernel, n_head=n_head, hd=hd,
                               tq=tq, tk=tk, scale=1.0 / math.sqrt(hd))

    return pl.pallas_call(
        kernel,
        out_shape=jax.ShapeDtypeStruct((B, T, C), jnp.bfloat16),
        grid_spec=pltpu.PrefetchScalarGridSpec(
            num_scalar_prefetch=2,
            grid=(B, n_steps),
            # qkv3 is passed three times; the leading block index selects q/k/v,
            # so no wrapper-side slicing/transpose pass over HBM is needed.
            in_specs=[
                pl.BlockSpec((1, 1, tq, C), lambda b, s, qt, kt: (0, b, qt[s], 0)),
                pl.BlockSpec((1, 1, tk, C), lambda b, s, qt, kt: (1, b, kt[s], 0)),
                pl.BlockSpec((1, 1, tk, C), lambda b, s, qt, kt: (2, b, kt[s], 0)),
            ],
            out_specs=pl.BlockSpec((1, tq, C), lambda b, s, qt, kt: (b, qt[s], 0)),
            scratch_shapes=[
                pltpu.VMEM((n_head, tq, 128), jnp.float32),   # running max m (lane-dense)
                pltpu.VMEM((n_head, tq, 128), jnp.float32),   # running denom l
                pltpu.VMEM((tq, C), jnp.float32),             # running output acc
            ],
        ),
        compiler_params=pltpu.CompilerParams(
            # NOTE(v7x): with heads batched in-kernel, B is the parallel axis;
            # if a profile shows single-core occupancy at small B, switch it to
            # pltpu.CORE_PARALLEL.
            dimension_semantics=("parallel", "arbitrary"),
            vmem_limit_bytes=vmem_limit),
    )(qi_tbl, ki_tbl, qkv3, qkv3, qkv3)


# ---------------------------------------------------------------------------
# Stage 3: generic linear  y = x @ W_t + b   (row- and lane-tiled)
# ---------------------------------------------------------------------------
def _linear_kernel(x_ref, w_ref, b_ref, o_ref):
    x = x_ref[0].astype(jnp.bfloat16)                           # (tm, cin)
    y = jnp.dot(x, w_ref[...], preferred_element_type=jnp.float32) + b_ref[...]
    o_ref[0] = y.astype(o_ref.dtype)


def _linear(x, w_t, b, out_dtype, *, tm, tn, vmem_limit):
    B, T, cin = x.shape
    cout = w_t.shape[1]
    return pl.pallas_call(
        _linear_kernel,
        out_shape=jax.ShapeDtypeStruct((B, T, cout), out_dtype),
        grid_spec=pltpu.PrefetchScalarGridSpec(
            num_scalar_prefetch=0,
            grid=(B, T // tm, cout // tn),    # n innermost: x block DMA elided
            in_specs=[
                pl.BlockSpec((1, tm, cin), lambda b, t, n: (b, t, 0)),
                pl.BlockSpec((cin, tn), lambda b, t, n: (0, n)),
                pl.BlockSpec((1, tn), lambda b, t, n: (0, n)),
            ],
            out_specs=pl.BlockSpec((1, tm, tn), lambda b, t, n: (b, t, n)),
        ),
        compiler_params=pltpu.CompilerParams(
            dimension_semantics=("parallel", "parallel", "arbitrary"),
            vmem_limit_bytes=vmem_limit),
    )(x, w_t, b)


# ---------------------------------------------------------------------------
# Full module forward
# ---------------------------------------------------------------------------
def causal_self_attention(x, params, n_head, *, row_block=512, attn_block=512):
    """x: (B, T, C) float32. params: PyTorch-convention (out,in) weights / biases."""
    B, T, C = x.shape
    assert C % n_head == 0
    vmem_limit = _vmem_limit_bytes()

    # Wrapper-side weight prep (constants; free layout plumbing):
    #   * transpose to (in, out) so kernels compute x @ W directly
    #   * stack Wq/Wk/Wv along a leading axis -> per-step weight block is (C, C)
    #   * MXU operands in bf16, f32 accumulation inside the kernels
    w_qkv3 = jnp.stack([params["wq"].T, params["wk"].T, params["wv"].T]
                       ).astype(jnp.bfloat16)                        # (3, C, C)
    b_qkv3 = jnp.stack([params["bq"], params["bk"], params["bv"]]
                       ).reshape(3, 1, C).astype(jnp.float32)        # (3, 1, C)
    w_p = params["wp"].T.astype(jnp.bfloat16)                        # (C, C)
    b_p = params["bp"].reshape(1, C).astype(jnp.float32)             # (1, C)

    tm = _pick_row_block(T, row_block)    # linear row tile (decoupled from attention)
    tq = _pick_row_block(T, attn_block)   # attention q/k row tile
    tn = _pick_lane_block(C)              # projection lane (cout) tile

    # 1) QKV projection straight into merged-head (3, B, T, C) bf16 layout.
    qkv3 = _qkv_projection(x, w_qkv3, b_qkv3, tm=tm, vmem_limit=vmem_limit)

    # 2) Flash-style causal attention over all heads, (B, T, C) in / out
    #    (no head split/merge transposes in HBM).
    y = _flash_attention(qkv3, n_head, tq=tq, tk=tq, vmem_limit=vmem_limit)

    # 3) Output projection (attn_drop / resid_drop are identity in eval mode).
    return _linear(y, w_p, b_p, x.dtype, tm=tm, tn=tn, vmem_limit=vmem_limit)


def _reference(x, params, n_head):
    """Pure-JAX f32 reference mirroring the PyTorch forward (eval mode)."""
    B, T, C = x.shape
    hd = C // n_head

    def lin(z, w, b):
        return jnp.einsum("btc,oc->bto", z, w) + b

    q = lin(x, params["wq"], params["bq"]).reshape(B, T, n_head, hd).transpose(0, 2, 1, 3)
    k = lin(x, params["wk"], params["bk"]).reshape(B, T, n_head, hd).transpose(0, 2, 1, 3)
    v = lin(x, params["wv"], params["bv"]).reshape(B, T, n_head, hd).transpose(0, 2, 1, 3)

    att = jnp.einsum("bhqd,bhkd->bhqk", q, k) * (1.0 / math.sqrt(hd))
    mask = jnp.tril(jnp.ones((T, T), dtype=bool))
    att = jnp.where(mask[None, None], att, -jnp.inf)
    att = jax.nn.softmax(att, axis=-1)
    y = jnp.einsum("bhqk,bhkd->bhqd", att, v)
    y = y.transpose(0, 2, 1, 3).reshape(B, T, C)
    return lin(y, params["wp"], params["bp"])


if __name__ == "__main__":
    def make_case(key, B, T, C):
        keys = jax.random.split(key, 9)
        bound = 1.0 / math.sqrt(C)  # PyTorch nn.Linear default init range
        params = {
            "wq": jax.random.uniform(keys[0], (C, C), jnp.float32, -bound, bound),
            "bq": jax.random.uniform(keys[1], (C,), jnp.float32, -bound, bound),
            "wk": jax.random.uniform(keys[2], (C, C), jnp.float32, -bound, bound),
            "bk": jax.random.uniform(keys[3], (C,), jnp.float32, -bound, bound),
            "wv": jax.random.uniform(keys[4], (C, C), jnp.float32, -bound, bound),
            "bv": jax.random.uniform(keys[5], (C,), jnp.float32, -bound, bound),
            "wp": jax.random.uniform(keys[6], (C, C), jnp.float32, -bound, bound),
            "bp": jax.random.uniform(keys[7], (C,), jnp.float32, -bound, bound),
        }
        x = jax.random.normal(keys[8], (B, T, C), jnp.float32)
        return x, params

    root = jax.random.PRNGKey(0)
    k_small, k_multi = jax.random.split(root)

    # Case 1: canonical small shapes (n_embd=32, n_head=4, head_dim=8).
    B, T, C, n_head = 2, 8, 32, 4
    x, params = make_case(k_small, B, T, C)
    out = jax.block_until_ready(causal_self_attention(x, params, n_head))
    ref = _reference(x, params, n_head)
    assert out.shape == (B, T, C)
    # bf16 MXU operands with f32 accumulation -> looser tolerance than pure f32.
    assert jnp.allclose(out, ref, atol=5e-2, rtol=5e-2), float(jnp.max(jnp.abs(out - ref)))

    # Case 2: forced 32-row tiles so the triangular multi-block grid, the
    # interior/diagonal branches and the online-softmax carry are exercised.
    B2, T2, C2, n_head2 = 1, 128, 32, 4
    x2, params2 = make_case(k_multi, B2, T2, C2)
    out2 = jax.block_until_ready(
        causal_self_attention(x2, params2, n_head2, row_block=32, attn_block=32))
    ref2 = _reference(x2, params2, n_head2)
    assert out2.shape == (B2, T2, C2)
    assert jnp.allclose(out2, ref2, atol=5e-2, rtol=5e-2), float(jnp.max(jnp.abs(out2 - ref2)))

    print("KERNEL_OK")
</pallas_src>

<mosaic_0001>
module attributes {stable_mosaic.version = 11 : i64} {
  func.func @_qkv_kernel(%arg0: i32, %arg1: i32, %arg2: i32, %arg3: memref<1x8x32xf32, #tpu.memory_space<vmem>>, %arg4: memref<1x32x32xbf16, #tpu.memory_space<vmem>>, %arg5: memref<1x1x32xf32, #tpu.memory_space<vmem>>, %arg6: memref<1x1x8x32xbf16, #tpu.memory_space<vmem>>) attributes {dimension_semantics = [#tpu.dimension_semantics<parallel>, #tpu.dimension_semantics<parallel>, #tpu.dimension_semantics<arbitrary>], iteration_bounds = array<i64: 2, 1, 3>, scalar_prefetch = 0 : i64, scratch_operands = 0 : i64, tpu.core_type = #tpu.core_type<tc>, window_params = [{transform_indices = @transform_0, window_bounds = array<i64: 1, 8, 32>}, {transform_indices = @transform_1, window_bounds = array<i64: 1, 32, 32>}, {transform_indices = @transform_2, window_bounds = array<i64: 1, 1, 32>}, {transform_indices = @transform_3, window_bounds = array<i64: 1, 1, 8, 32>}]} {
    %c0 = arith.constant 0 : index
    %c0_0 = arith.constant 0 : index
    %c0_1 = arith.constant 0 : index
    %0 = vector.load %arg3[%c0, %c0_0, %c0_1] : memref<1x8x32xf32, #tpu.memory_space<vmem>>, vector<1x8x32xf32>
    %1 = vector.shape_cast %0 : vector<1x8x32xf32> to vector<8x32xf32>
    %2 = arith.truncf %1 : vector<8x32xf32> to vector<8x32xbf16>
    %c0_2 = arith.constant 0 : index
    %c0_3 = arith.constant 0 : index
    %c0_4 = arith.constant 0 : index
    %3 = vector.load %arg4[%c0_2, %c0_3, %c0_4] : memref<1x32x32xbf16, #tpu.memory_space<vmem>>, vector<1x32x32xbf16>
    %4 = vector.shape_cast %3 : vector<1x32x32xbf16> to vector<32x32xbf16>
    %cst = arith.constant dense<0.000000e+00> : vector<8x32xf32>
    %5 = tpu.matmul %2, %4, %cst {dimension_numbers = #tpu.dot_dimension_numbers<[1], [0], [0], [1], [0, 0, 1, 1], [], []>} : vector<8x32xbf16>, vector<32x32xbf16>, vector<8x32xf32> -> vector<8x32xf32>
    %c0_5 = arith.constant 0 : index
    %c0_6 = arith.constant 0 : index
    %c0_7 = arith.constant 0 : index
    %6 = vector.load %arg5[%c0_5, %c0_6, %c0_7] : memref<1x1x32xf32, #tpu.memory_space<vmem>>, vector<1x1x32xf32>
    %7 = vector.shape_cast %6 : vector<1x1x32xf32> to vector<1x32xf32>
    %8 = vector.broadcast %7 : vector<1x32xf32> to vector<8x32xf32>
    %9 = arith.addf %5, %8 : vector<8x32xf32>
    %10 = arith.truncf %9 : vector<8x32xf32> to vector<8x32xbf16>
    %c0_8 = arith.constant 0 : index
    %c0_9 = arith.constant 0 : index
    %c0_10 = arith.constant 0 : index
    %c0_11 = arith.constant 0 : index
    %11 = vector.load %arg6[%c0_8, %c0_9, %c0_10, %c0_11] : memref<1x1x8x32xbf16, #tpu.memory_space<vmem>>, vector<1x1x8x32xbf16>
    %12 = vector.shape_cast %11 : vector<1x1x8x32xbf16> to vector<8x32xbf16>
    %13 = vector.shape_cast %10 : vector<8x32xbf16> to vector<1x1x8x32xbf16>
    tpu.vector_store %arg6[%c0_8, %c0_9, %c0_10, %c0_11], %13 {strides = array<i32>} : memref<1x1x8x32xbf16, #tpu.memory_space<vmem>>, vector<1x1x8x32xbf16>,
    return
  }
  func.func @transform_0(%arg0: i32, %arg1: i32, %arg2: i32) -> (i32, i32, i32) {
    %c0_i32 = arith.constant 0 : i32
    %c0_i32_0 = arith.constant 0 : i32
    return %arg0, %arg1, %c0_i32 : i32, i32, i32
  }
  func.func @transform_1(%arg0: i32, %arg1: i32, %arg2: i32) -> (i32, i32, i32) {
    %c0_i32 = arith.constant 0 : i32
    %c0_i32_0 = arith.constant 0 : i32
    %c0_i32_1 = arith.constant 0 : i32
    return %arg2, %c0_i32, %c0_i32_0 : i32, i32, i32
  }
  func.func @transform_2(%arg0: i32, %arg1: i32, %arg2: i32) -> (i32, i32, i32) {
    %c0_i32 = arith.constant 0 : i32
    %c0_i32_0 = arith.constant 0 : i32
    %c0_i32_1 = arith.constant 0 : i32
    return %arg2, %c0_i32, %c0_i32_0 : i32, i32, i32
  }
  func.func @transform_3(%arg0: i32, %arg1: i32, %arg2: i32) -> (i32, i32, i32, i32) {
    %c0_i32 = arith.constant 0 : i32
    %c0_i32_0 = arith.constant 0 : i32
    return %arg2, %arg0, %arg1, %c0_i32 : i32, i32, i32, i32
  }
}

</mosaic_0001>

<bundles_post_ra>
// kernel: tpu_custom_call.1
= control target key start
LH: loop header
LB: loop body
LE: loop exit
PB: predicated region body
PF: predicated region fallthrough
CT: control target
= control target key end

     0   :  { %s1208_s0 = inlined_call_operand.hbm [shape: f32[2,8,32], index: 0, kind: input, shape index: {}]   ;;  %s1209_s1 = inlined_call_operand.hbm [shape: bf16[3,32,32], index: 1, kind: input, shape index: {}]   ;;  %s1210_s2 = inlined_call_operand.vmem [shape: f32[3,1,32], index: 2, kind: input, shape index: {}]   ;;  %s1211_s3 = inlined_call_operand.hbm [shape: bf16[3,2,8,32], index: 3, kind: output, shape index: {}]  }
   0x1   :  { %1225 = sst [smem:[#allocation18_spill]] %s1208_s0 }
   0x2   :  { %1226 = sst [smem:[#allocation19_spill]] %s1211_s3 }
   0x3   :  { %8 = vsyncpa [#allocation3], 0 }
   0x4   :  { %10 = vsyncpa [#allocation3 + $0x1], 0 }
   0x5   :  { %11 = vsyncpa [#allocation6], 0 }
   0x6   :  { %13 = vsyncpa [#allocation6 + $0x1], 0 }
   0x7   :  { %14 = vsyncpa [#allocation4], 0 }
   0x8   :  { %16 = vsyncpa [#allocation4 + $0x1], 0  ;;  %s886_s12 = smov 0   ;;  %s888_s13 = smov 0  }
   0x9   :  { %s890_s14 = smov 0   ;;  %s892_s15 = smov 0  }
   0xa   :  { %s894_s16 = smov 0   ;;  %s896_s17 = smov 0  }
   0xb   :  { %s898_s18 = smov 0   ;;  %s900_s19 = smov 0  }
   0xc   :  { %s902_s20 = smov 0   ;;  %s904_s21 = smov 0  }
   0xd   :  { %s906_s22 = smov 0   ;;  %s908_s23 = smov 0  }
   0xe   :  { %s910_s24 = smov 0   ;;  %s912_s25 = smov 0  }
   0xf LB: > { %1227 = sst [smem:[#allocation11_spill]] %s805_s12  ;;  %s476_s26 = sadd.s32 4294967295, %s857_s25   ;;  %s857_s25 = sphi %s912_s25, %s22_s25   ;;  %s853_s24 = sphi %s910_s24, %s1262_s24   ;;  %s849_s23 = sphi %s908_s23, %s1273_s23   ;;  %s845_s22 = sphi %s906_s22, %s1260_s22   ;;  %s841_s21 = sphi %s904_s21, %s1272_s21   ;;  %s837_s20 = sphi %s902_s20, %s1271_s20   ;;  %s833_s19 = sphi %s900_s19, %s1270_s19   ;;  %s829_s18 = sphi %s898_s18, %s1269_s18   ;;  %s825_s17 = sphi %s896_s17, %s1268_s17   ;;  %s821_s16 = sphi %s894_s16, %s1267_s16   ;;  %s817_s15 = sphi %s892_s15, %s1266_s15   ;;  %s813_s14 = sphi %s890_s14, %s1265_s14   ;;  %s809_s13 = sphi %s888_s13, %s1264_s13   ;;  %s805_s12 = sphi %s886_s12, %s1263_s12  }
  0x10   : > { %1228 = sst [smem:[#allocation12_spill]] %s853_s24  ;;  %p57_p0 = scmp.ne.s32.totalorder %s837_s20, %s833_s19 }
  0x11   : > { %1229 = sst [smem:[#allocation13_spill]] %s857_s25  ;;  %p58_p1 = scmp.eq.s32.totalorder %s857_s25, 0 }
  0x12   : > { %p63_p2 = scmp.ne.s32.totalorder %s833_s19, %s829_s18  ;;  %p64_p3 = scmp.eq.s32.totalorder %s476_s26, 0 }
  0x13   : > { %p83_p4 = scmp.ne.s32.totalorder %s825_s17, %s821_s16  ;;  %p961_p5 = por %p58_p1, %p57_p0 }
  0x14   : > { %p89_p6 = scmp.ne.s32.totalorder %s821_s16, %s817_s15  ;;  %p966_p7 = por %p64_p3, %p63_p2 }
  0x15   : > { %p85_p8 = por %p83_p4, %p58_p1  ;;  %p974_p10 = scmp.eq.s32.totalorder %s476_s26, 5 }
  0x16   : > { %s1231_s30 = scalar_select %p966_p7, 1, 0 }
  0x17   : > { %p970_p9 = por %p89_p6, %p64_p3  ;;  %p527_p11 = scmp.lt.s32.totalorder %s857_s25, 6 }
  0x18   : > { %s169_s6 = sand.u32 1, %s837_s20   ;;  %s481_s7 = sshll.u32 %s853_s24, 7 }
  0x19   : > { %s1232_s4 = scalar_select %p970_p9, 1, 0 }
  0x1a   : > { %s480_s8 = sshll.u32 %s169_s6, 3  ;;  %s1234_s0 = sld [smem:[#allocation18_spill]] }
  0x1b   : > { %s173_s15 = scalar_lea.vmem [#allocation2], %s480_s8  ;;  %p988_p12 = pnand %p527_p11, %p961_p5 }
  0x1c   : > { %s181_s18 = sshll.u32 %s173_s15, 4  ;;  %p994_p13 = pnand %p527_p11, %p85_p8  ;;  %s992_s18 = int_to_ptr.vmem [resolvable:$true] %s181_s18 }
  0x1d   : > { %p649_p2 = pneg %p988_p12 }
  0x1e   : > { %s1236_s28 = scalar_select %p994_p13, 1, 0 }
  0x20   : > { %s984_s11 = scalar_lea.hbm %s1234_s0, %s481_s7  ;;  %s170_s7 = scalar_lea.sflag [#allocation3], %s169_s6 }
  0x21   : > { %s647_s9 = scalar_lea.hbm %s984_s11, 128  ;;  %s652_s10 = scalar_lea.hbm %s1234_s0, 256 }
  0x22   : > { %p648_p1 = scmp.ne.s32.totalorder %s984_s11, %s647_s9  ;;  %p653_p5 = scmp.lt.u32.totalorder %s984_s11, %s1234_s0 }
  0x23   : > { %p654_p6 = scmp.lt.u32.totalorder %s652_s10, %s647_s9  ;;  %p656_p11 = scmp.lt.u32.totalorder %s647_s9, %s984_s11 }
  0x24   : > { %p650_p3 = pnand %p649_p2, %p648_p1 }
  0x25   : > { %p655_p8 = por %p654_p6, %p653_p5 }
  0x26   : > { %p651_p4 = pneg %p650_p3 }
  0x27   : > { %p657_p0 = por %p656_p11, %p655_p8 }
  0x29   : > { %p658_p9 = pnand %p657_p0, %p651_p4 }
  0x2b   : > { %661 = shalt.err (!%p658_p9)
}
  0x2c   : > { %s662_s6 = scalar_lea.vmem %s992_s18, 128  ;;  %s859_s29 = smov [#allocation2]  }
  0x2d   : > { %p663_p1 = scmp.ne.s32.totalorder %s992_s18, %s662_s6  ;;  %s667_s8 = sshll.u32 %s859_s29, 4  ;;  %s668_s8 = int_to_ptr.vmem [resolvable:$false] %s667_s8 }
  0x2e   : > { %s669_s27 = scalar_lea.vmem %s668_s8, 256  ;;  %p670_p13 = scmp.lt.s32.totalorder %s992_s18, %s668_s8 }
  0x2f   : > { %p665_p3 = pnand %p663_p1, %p649_p2  ;;  %p671_p5 = scmp.lt.s32.totalorder %s669_s27, %s662_s6 }
  0x31   : > { %p666_p7 = pneg %p665_p3  ;;  %p672_p6 = por %p671_p5, %p670_p13 }
  0x33   : > { %p673_p8 = pnand %p672_p6, %p666_p7 }
  0x35   : > { %676 = shalt.err (!%p673_p8)
}
  0x36   : > { %519 = dma.hbm_to_vmem [thread:$0]  (!%p988_p12), %s984_s11, 128, %s992_s18, %s170_s7  }
  0x37   : > { %p213_p7 = scmp.lt.s32.totalorder %s857_s25, 7  ;;  %p1237_p9 = scmp.ge.s32.totalorder %s857_s25, 1 }
  0x38   : > { %s477_s9 = sadd.s32 4294967294, %s857_s25   ;;  %s34_s10 = sadd.s32 1, %s849_s23 }
  0x39   : > { %p1027_p13 = pnand %p1237_p9, %p213_p7  ;;  %s76_s15 = sadd.s32 1, %s825_s17 }
  0x3a   : > { %p35_p0 = scmp.ge.s32.totalorder %s34_s10, 3  ;;  %s132_s6 = sadd.s32 1, %s813_s14 }
  0x3b   : > { %p142_p2 = scmp.ne.s32.totalorder %s813_s14, %s809_s13  ;;  %p148_p4 = scmp.ne.s32.totalorder %s809_s13, %s805_s12 }
  0x3c   : > { %s1275_s10 = smov (%p35_p0, %s34_s10), 0  ;;  %s1240_s11 = sadd.s32 1, %s853_s24 }
  0x3d   : > { %1239 = sst [smem:[#allocation14_spill]] %s1275_s10  ;;  %s1277_s11 = smov (!%p35_p0, %s1240_s11), %s853_s24 }
  0x3e   : > { %s73_s18 = ssub.s32 %s849_s23, %s1275_s10  ;;  %p1048_p12 = por %p974_p10, %p142_p2 }
  0x3f   : > { %p43_p11 = scmp.ge.s32.totalorder %s1277_s11, 2  ;;  %p74_p1 = scmp.eq.s32.totalorder %s73_s18, 0 }
  0x40   : > { %s1241_s7 = scalar_select %p1048_p12, 1, 0 }
  0x41   : > { %p149_p3 = scmp.eq.s32.totalorder %s477_s9, 5  ;;  %s188_s29 = sand.u32 1, %s825_s17  }
  0x42   : > { %1242 = sst [smem:[#allocation15_spill]] %s1241_s7  ;;  %s1279_s11 = smov (%p43_p11, %s1277_s11), 0 }
  0x43   : > { %1243 = sst [smem:[#allocation16_spill]] %s1279_s11  ;;  %s45_s27 = ssub.s32 %s853_s24, %s1279_s11 }
  0x44   : > { %s1056_s8 = scalar_select %p74_p1, %s825_s17, %s76_s15  }
  0x45   : > { %p1060_p5 = por %p149_p3, %p148_p4  ;;  %p48_p10 = scmp.eq.s32.totalorder %s45_s27, 0 }
  0x46   : > { %1244 = sst [smem:[#allocation17_spill]] %s1056_s8  ;;  %s127_s5 = sor.u32 %s73_s18, %s45_s27 }
  0x47   : > { %s1245_s0 = scalar_select %p1060_p5, 1, 0 }
  0x48   : > { %p130_p6 = scmp.eq.s32.totalorder %s127_s5, 0  ;;  %s1246_s10 = sadd.s32 1, %s837_s20 }
  0x49   : > { %s1067_s12 = scalar_select %p48_p10, %s837_s20, %s1246_s10  }
  0x4a   : > { %s1070_s9 = scalar_select %p130_p6, %s813_s14, %s132_s6  }
  0x4b   : > { %s482_s25 = sshll.u32 %s188_s29, 4  ;;  %s498_s3 = sshll.u32 %s849_s23, 8 }
  0x4c   : > { %s1076_s11 = scalar_lea.hbm %s1209_s1, %s498_s3  ;;  %s192_s24 = scalar_lea.vmem [#allocation5], %s482_s25 }
  0x4d   : > { %s199_s8 = sshll.u32 %s192_s24, 4  ;;  %s1080_s18 = scalar_lea.sflag [#allocation6], %s188_s29  ;;  %s1078_s8 = int_to_ptr.vmem [resolvable:$true] %s199_s8 }
  0x4e   : > { %s677_s10 = scalar_lea.hbm %s1076_s11, 256  ;;  %p1247_p7 = scmp.ne.s32.totalorder %s1236_s28, 0 }
  0x4f   : > { %p678_p8 = scmp.ne.s32.totalorder %s1076_s11, %s677_s10  ;;  %s682_s7 = scalar_lea.hbm %s1209_s1, 768 }
  0x50   : > { %p679_p9 = pneg %p1247_p7  ;;  %p683_p4 = scmp.lt.u32.totalorder %s1076_s11, %s1209_s1 }
  0x51   : > { %p684_p11 = scmp.lt.u32.totalorder %s682_s7, %s677_s10  ;;  %p686_p3 = scmp.lt.u32.totalorder %s677_s10, %s1076_s11 }
  0x52   : > { %p680_p0 = pnand %p679_p9, %p678_p8 }
  0x53   : > { %p685_p1 = por %p684_p11, %p683_p4 }
  0x54   : > { %p681_p2 = pneg %p680_p0 }
  0x55   : > { %p687_p10 = por %p686_p3, %p685_p1 }
  0x57   : > { %p688_p6 = pnand %p687_p10, %p681_p2 }
  0x59   : > { %691 = shalt.err (!%p688_p6)
}
  0x5a   : > { %s692_s24 = scalar_lea.vmem %s1078_s8, 256  ;;  %s860_s25 = smov [#allocation5]  }
  0x5b   : > { %p693_p8 = scmp.ne.s32.totalorder %s1078_s8, %s692_s24  ;;  %s697_s29 = sshll.u32 %s860_s25, 4  ;;  %s698_s29 = int_to_ptr.vmem [resolvable:$false] %s697_s29 }
  0x5c   : > { %s699_s15 = scalar_lea.vmem %s698_s29, 512  ;;  %p700_p12 = scmp.lt.s32.totalorder %s1078_s8, %s698_s29 }
  0x5d   : > { %p695_p0 = pnand %p693_p8, %p679_p9  ;;  %p701_p4 = scmp.lt.s32.totalorder %s699_s15, %s692_s24 }
  0x5f   : > { %p696_p5 = pneg %p695_p0  ;;  %p702_p11 = por %p701_p4, %p700_p12 }
  0x61   : > { %p703_p1 = pnand %p702_p11, %p696_p5 }
  0x63   : > { %706 = shalt.err (!%p703_p1)
}
  0x64   : > { %s861_s10 = smov 64   ;;  %s862_s3 = smov 4  }
  0x65   : > { %522 = dma.hbm_to_vmem [thread:$0]  (!%p1247_p7), %s1076_s11, 256, %s1078_s8, %s1080_s18, %s861_s10, %s861_s10, %s862_s3  }
  0x66   : > { %217 = sbr.rel (%p1027_p13) target bundleno = 353 (0x161), region = 32  ;;  %s219_s6 = sand.u32 (!%p1027_p13), 1, %s833_s19  }
  0x67   : > { %s486_s7 = sshll.u32 (!%p1027_p13), %s219_s6, 3  ;;  %s220_s27 = scalar_lea.sflag (!%p1027_p13), [#allocation3], %s219_s6 }
  0x68   : > { %s223_s5 = scalar_lea.vmem (!%p1027_p13), [#allocation2], %s486_s7  ;;  %p1248_p12 = scmp.ne.s32.totalorder (!%p1027_p13), %s1231_s30, 0 }
  0x6d   : > { %792 = dma.done.wait (%p1248_p12), %s220_s27, 128  }
  0x6e   : > { %794 = vsyncadd (%p1248_p12), %s220_s27, 4294967168  ;;  %s228_s24 = sand.u32 1, %s821_s16   ;;  %p1249_p5 = scmp.ne.s32.totalorder %s1232_s4, 0 }
  0x6f   : > { %s487_s25 = sshll.u32 %s228_s24, 4  ;;  %s229_s28 = scalar_lea.sflag [#allocation6], %s228_s24 }
  0x70   : > { %s232_s11 = scalar_lea.vmem [#allocation5], %s487_s25 }
  0x71   : > { %796 = dma.done.wait (%p1249_p5), %s229_s28, 256  }
  0x72   : > { %798 = vsyncadd (%p1249_p5), %s229_s28, 4294967040  ;;  %v863_v0 = vmov 0.0   ;;  %vm864_vm0 = vmmov 0   ;;  %v645_v1 = vld [vmem:[%s232_s11] sm:$0xff]   ;;  %v646_v2 = vld [vmem:[%s232_s11 + $0x8] sm:$0xff]   ;;  %vm292_vm1 = vcmask 261120  }
  0x73   : > { %502 = vmatprep.subr.bf16.mxu0 %v863_v0  ;;  %506 = vmatprep.mubr.msk.bf16.mxu0 %vm864_vm0, %v863_v0  ;;  %v267_v3 = vld [vmem:[%s223_s5] sm:$0xff]  ;;  %p263_p13 = scmp.lt.s32.totalorder %s841_s21, 2  ;;  %s260_s4 = sand.u32 1, %s809_s13   ;;  %vm337_vm2 = vcmask 257024  }
  0x74   : > { %503 = vmatpush3.bf16.msra.mxu0 %v645_v1  ;;  %v268_v4 = vpack.c.bf16 %v267_v3, %v267_v3  ;;  %s488_s26 = sshll.u32 %s260_s4, 2  ;;  %s494_s8 = sshll.u32 %s841_s21, 1 }
  0x75   : > { %504 = vmatprep.subr.bf16.mxu0 %v863_v0  ;;  %s264_s30 = scalar_select %p263_p13, %s841_s21, 2 }
  0x76   : > { %s352_s10 = sadd.s32 %s845_s22, %s494_s8  ;;  %s1250_s3 = sld [smem:[#allocation15_spill]] }
  0x77   : > { %s265_s15 = scalar_lea.vmem %s1210_s2, %s264_s30  ;;  %s495_s6 = sshll.u32 %s352_s10, 6 }
  0x78   : > { %505 = vmatpush3.bf16.msra.mxu0 %v646_v2  ;;  %v489_v5 = vld [vmem:[%s265_s15] ss:$0 sm:$0xff]  ;;  %s262_s7 = scalar_lea.vmem [#allocation7], %s488_s26  ;;  %s1251_s21 = sld [smem:[#allocation19_spill]] }
  0x79   : > { %s356_s27 = sshll.u32 %s262_s7, 4  ;;  %s340_s22 = scalar_lea.sflag [#allocation4], %s260_s4  ;;  %s1133_s27 = int_to_ptr.vmem [resolvable:$true] %s356_s27 }
  0x7a   : > { %s707_s11 = scalar_lea.vmem %s1133_s27, 64  ;;  %s865_s30 = smov [#allocation7]  }
  0x7b   : > { %507 = vmatmul.mubr.msk.bf16.vlgmr.msra.gmra.mrb[0].mxu0 %vm292_vm1, %v268_v4  ;;  %p708_p7 = scmp.ne.s32.totalorder %s1133_s27, %s707_s11  ;;  %s711_s26 = sshll.u32 %s865_s30, 4  ;;  %s712_s26 = int_to_ptr.vmem [resolvable:$false] %s711_s26 }
  0x7c   : > { %p1253_p9 = scmp.ne.s32.totalorder %s1250_s3, 0  ;;  %s713_s8 = scalar_lea.vmem %s712_s26, 128 }
  0x7d   : > { %p714_p10 = scmp.lt.s32.totalorder %s1133_s27, %s712_s26  ;;  %p715_p6 = scmp.lt.s32.totalorder %s713_s8, %s707_s11 }
  0x7e   : > { %s1252_s28 = smov %s1251_s21  ;;  %s1131_s25 = scalar_lea.hbm %s1251_s21, %s495_s6 }
  0x7f   : > { %p709_p2 = pnand %p708_p7, %p1253_p9  ;;  %p716_p8 = por %p715_p6, %p714_p10 }
  0x81   : > { %p710_p3 = pneg %p709_p2 }
  0x83   : > { %p717_p0 = pnand %p716_p8, %p710_p3 }
 0x14e   : > { %v330_v6 = vpop.f32.mrb[0].mxu0 }
 0x14f   : > { %v331_v7 = vadd.f32 %v489_v5, %v330_v6  ;;  %v508_v8 = vpop.f32.mrb[1].mxu0 }
 0x150   : > { %v333_v9 = vpop.f32.mrb[2].mxu0 }
 0x151   : > { %v336_v10 = vpack.c.bf16 %v331_v7, %v331_v7  ;;  %v509_v11 = vpop.f32.mrb[3].mxu0 }
 0x153   : > { %338 = vst.msk [vmem:[%s262_s7] sm:$0xf] %vm337_vm2, %v336_v10 }
 0x154   : > { %720 = shalt.err (!%p717_p0)
}
 0x155   : > { %s721_s4 = scalar_lea.hbm %s1131_s25, 64  ;;  %s725_s15 = scalar_lea.hbm %s1252_s28, 384 }
 0x156   : > { %p722_p4 = scmp.ne.s32.totalorder %s1131_s25, %s721_s4  ;;  %p726_p12 = scmp.lt.u32.totalorder %s1131_s25, %s1252_s28 }
 0x157   : > { %p727_p5 = scmp.lt.u32.totalorder %s725_s15, %s721_s4  ;;  %p729_p7 = scmp.lt.u32.totalorder %s721_s4, %s1131_s25 }
 0x158   : > { %p723_p11 = pnand %p722_p4, %p1253_p9 }
 0x159   : > { %p728_p13 = por %p727_p5, %p726_p12 }
 0x15a   : > { %p724_p1 = pneg %p723_p11 }
 0x15b   : > { %p730_p2 = por %p729_p7, %p728_p13 }
 0x15d   : > { %p731_p3 = pnand %p730_p2, %p724_p1 }
 0x15f   : > { %734 = shalt.err (!%p731_p3)
}
 0x160   : > { %514 = dma.vmem_to_hbm [thread:$0]  (%p1253_p9), %s1133_s27, 64, %s1131_s25, %s340_s22  }
 0x161 PF: > { %s1254_s7 = sld [smem:[#allocation13_spill]]  ;;  %s1255_s5 = sld [smem:[#allocation11_spill]] }
 0x162   : > { %p1256_p6 = scmp.ne.s32.totalorder %s1245_s0, 0 }
 0x167   : > { %p528_p10 = scmp.ge.s32.totalorder %s1254_s7, 2  ;;  %s368_s24 = sand.u32 1, %s1255_s5  }
 0x168   : > { %s369_s21 = scalar_lea.sflag [#allocation4], %s368_s24 }
 0x169   : > { %p524_p8 = pnand %p528_p10, %p1256_p6 }
 0x16b   : > { %800 = dma.done.wait (!%p524_p8), %s369_s21, 64  }
 0x16c   : > { %802 = vsyncadd (!%p524_p8), %s369_s21, 4294967232  ;;  %s22_s25 = sadd.s32 1, %s1254_s7   ;;  %s1258_s3 = sld [smem:[#allocation17_spill]] }
 0x16d   : > { %p1161_p0 = scmp.ge.s32.totalorder %s22_s25, 8   ;;  %s1259_s27 = smov %s1067_s12 }
 0x16e   : > { %s1260_s22 = sld [smem:[#allocation12_spill]]  ;;  %s1261_s0 = sld [smem:[#allocation14_spill]] }
 0x16f   : > { %s1262_s24 = sld [smem:[#allocation16_spill]]  ;;  %s1263_s12 = smov %s809_s13 }
 0x170   : > { %s1264_s13 = smov %s813_s14  ;;  %s1265_s14 = smov %s1070_s9 }
 0x171   : > { %s1266_s15 = smov %s821_s16  ;;  %s1267_s16 = smov %s825_s17 }
 0x172   : > { %s1268_s17 = smov %s1258_s3  ;;  %s1269_s18 = smov %s833_s19 }
 0x173   : > { %s1270_s19 = smov %s837_s20  ;;  %s1271_s20 = smov %s1259_s27 }
 0x174   : > { %s1272_s21 = smov %s849_s23  ;;  %s1273_s23 = smov %s1261_s0 }
 0x175   :  { %21 = sbr.rel (!%p1161_p0) target bundleno = 15 (0xf), region = 93 }
 0x17c   :  { %374 = vsyncpa [#allocation3], 1 }
 0x17d   :  { %376 = vsyncpa [#allocation3 + $0x1], 1 }
 0x17e   :  { %377 = vsyncpa [#allocation6], 1 }
 0x17f   :  { %379 = vsyncpa [#allocation6 + $0x1], 1 }
 0x180   :  { %380 = vsyncpa [#allocation4], 1 }
 0x181   :  { %382 = vsyncpa [#allocation4 + $0x1], 1 }

</bundles_post_ra>
